<compile_context>
chip_gen: v5e
topology: v5e:2x2
jax: 0.10.0
libtpu: 0.0.40
codegen_flags: <defaults>
</compile_context>

<pallas_src>
import jax
import jax.numpy as jnp
from jax.experimental import pallas as pl
from jax.experimental.pallas import tpu as pltpu

# ------------------ PatchMerge configuration ------------------
DIM = 64            # input channels C
WS = 2              # merge window (depthwise kernel size == stride)
OUT_DIM = 2 * DIM   # output channels
BN_EPS = 1e-5


# -------------------- Pallas kernel --------------------
def patch_merge_kernel(xw_ref, w_ref, b_ref, o_ref):
    """One row tile: (tm, ws*ws*C) @ (ws*ws*C, 2C) + bias -> (tm, 2C)."""
    acc = jnp.dot(xw_ref[...], w_ref[...], preferred_element_type=jnp.float32)
    o_ref[...] = (acc + b_ref[...]).astype(o_ref.dtype)


# -------------------- wrapper --------------------
@jax.jit
def patch_merge_forward(x, params):
    B, N, C = x.shape
    h = w = int(round(N ** 0.5))
    hl, wl = h // WS, w // WS
    nl = hl * wl
    k = WS * WS * C
    d_out = 2 * C

    # ---- trace-time folding: depthwise * pointwise * BN(eval) scale ----
    s = params["bn_gamma"] / jnp.sqrt(params["bn_var"] + BN_EPS)            # (2C,)
    wd = params["dw_w"].reshape(C, WS * WS).T                               # (ws*ws, C)
    wp_eff = params["pw_w"].T * s[None, :]                                  # (C, 2C)
    w_fused = (wd[:, :, None] * wp_eff[None, :, :]).reshape(k, d_out)       # (k, 2C)
    b_fused = (s * (params["pw_w"] @ params["dw_b"] + params["pw_b"]
                    - params["bn_mean"]) + params["bn_beta"])               # (2C,)

    # ---- layout plumbing: raster tokens -> window-flattened rows ----
    # (B, hl, ws, wl, ws, C) -> (B, hl, wl, ws, ws, C) -> (B*Nl, ws*ws*C)
    xw = (x.reshape(B, hl, WS, wl, WS, C)
            .transpose(0, 1, 3, 2, 4, 5)
            .reshape(B * nl, k))

    # Row tiling: fold batch into rows, pad to a multiple of the tile so every
    # block is full (no ragged edges / masked partial stores).
    m = B * nl
    tm = min(512, max(8, ((m + 7) // 8) * 8))
    m_pad = pl.cdiv(m, tm) * tm
    if m_pad != m:
        xw = jnp.pad(xw, ((0, m_pad - m), (0, 0)))

    xw_bf16 = xw.astype(jnp.bfloat16)
    w_bf16 = w_fused.astype(jnp.bfloat16)
    b_f32 = b_fused.reshape(1, d_out).astype(jnp.float32)

    cost = pl.CostEstimate(
        flops=2 * m_pad * k * d_out,
        transcendentals=0,
        bytes_accessed=(xw_bf16.size * 2 + w_bf16.size * 2
                        + b_f32.size * 4 + m_pad * d_out * 4),
    )

    out = pl.pallas_call(
        patch_merge_kernel,
        grid=(m_pad // tm,),
        in_specs=[
            pl.BlockSpec((tm, k), lambda i: (i, 0)),
            pl.BlockSpec((k, d_out), lambda i: (0, 0)),   # weight resident
            pl.BlockSpec((1, d_out), lambda i: (0, 0)),   # bias resident
        ],
        out_specs=pl.BlockSpec((tm, d_out), lambda i: (i, 0)),
        out_shape=jax.ShapeDtypeStruct((m_pad, d_out), jnp.float32),
        compiler_params=pltpu.CompilerParams(
            dimension_semantics=("parallel",)),
        cost_estimate=cost,
    )(xw_bf16, w_bf16, b_f32)

    return out[:m].reshape(B, nl, d_out)


# ---------- pure-JAX reference (mirrors the torch module, NCHW) ----------
def patch_merge_reference(x, params):
    B, N, C = x.shape
    h = w = int(round(N ** 0.5))
    hl, wl = h // WS, w // WS
    xi = x.transpose(0, 2, 1).reshape(B, C, h, w)                           # NCHW
    # depthwise conv (k=ws, stride=ws, padding=0, groups=C)
    xw = xi.reshape(B, C, hl, WS, wl, WS)
    dw = (jnp.einsum("bcipjq,cpq->bcij", xw, params["dw_w"])
          + params["dw_b"][None, :, None, None])
    # pointwise 1x1 conv C -> 2C
    pw = (jnp.einsum("bcij,dc->bdij", dw, params["pw_w"])
          + params["pw_b"][None, :, None, None])
    # BatchNorm2d in eval mode
    y = ((pw - params["bn_mean"][None, :, None, None])
         / jnp.sqrt(params["bn_var"][None, :, None, None] + BN_EPS)
         * params["bn_gamma"][None, :, None, None]
         + params["bn_beta"][None, :, None, None])
    return y.reshape(B, 2 * C, hl * wl).transpose(0, 2, 1)


if __name__ == "__main__":
    B, Hsp, Wsp = 2, 8, 8
    N = Hsp * Wsp

    key = jax.random.PRNGKey(0)
    keys = jax.random.split(key, 9)

    def init(k, shape, fan_in, scale=1.0):
        return (jax.random.normal(k, shape, jnp.float32)
                * (scale / jnp.sqrt(jnp.float32(fan_in))))

    params = {
        "dw_w":     init(keys[0], (DIM, WS, WS), WS * WS),
        "dw_b":     init(keys[1], (DIM,), 1, 0.1),
        "pw_w":     init(keys[2], (OUT_DIM, DIM), DIM),
        "pw_b":     init(keys[3], (OUT_DIM,), 1, 0.1),
        "bn_gamma": 1.0 + 0.1 * jax.random.normal(keys[4], (OUT_DIM,), jnp.float32),
        "bn_beta":  0.1 * jax.random.normal(keys[5], (OUT_DIM,), jnp.float32),
        "bn_mean":  0.1 * jax.random.normal(keys[6], (OUT_DIM,), jnp.float32),
        "bn_var":   jnp.abs(jax.random.normal(keys[7], (OUT_DIM,), jnp.float32)) + 0.5,
    }
    x = jax.random.normal(keys[8], (B, N, DIM), jnp.float32)

    out = jax.block_until_ready(patch_merge_forward(x, params))
    assert out.shape == (B, N // (WS * WS), OUT_DIM)

    ref = patch_merge_reference(x, params)
    max_err = float(jnp.max(jnp.abs(out - ref) / (1.0 + jnp.abs(ref))))
    if not (max_err < 5e-2):
        raise SystemExit(f"mismatch vs reference: max scaled err = {max_err}")

    print("KERNEL_OK")
</pallas_src>

<mosaic_0001>
module attributes {stable_mosaic.version = 11 : i64} {
  func.func @patch_merge_kernel(%arg0: i32, %arg1: memref<32x256xbf16, #tpu.memory_space<vmem>>, %arg2: memref<256x128xbf16, #tpu.memory_space<vmem>>, %arg3: memref<1x128xf32, #tpu.memory_space<vmem>>, %arg4: memref<32x128xf32, #tpu.memory_space<vmem>>) attributes {dimension_semantics = [#tpu.dimension_semantics<parallel>], iteration_bounds = array<i64: 1>, scalar_prefetch = 0 : i64, scratch_operands = 0 : i64, tpu.core_type = #tpu.core_type<tc>, window_params = [{transform_indices = @transform_0, window_bounds = array<i64: 32, 256>}, {pipeline_mode = #tpu.pipeline_mode<synchronous>, transform_indices = @transform_1, window_bounds = array<i64: 256, 128>}, {pipeline_mode = #tpu.pipeline_mode<synchronous>, transform_indices = @transform_2, window_bounds = array<i64: 1, 128>}, {transform_indices = @transform_3, window_bounds = array<i64: 32, 128>}]} {
    %c0 = arith.constant 0 : index
    %c0_0 = arith.constant 0 : index
    %0 = vector.load %arg1[%c0, %c0_0] : memref<32x256xbf16, #tpu.memory_space<vmem>>, vector<32x256xbf16>
    %c0_1 = arith.constant 0 : index
    %c0_2 = arith.constant 0 : index
    %1 = vector.load %arg2[%c0_1, %c0_2] : memref<256x128xbf16, #tpu.memory_space<vmem>>, vector<256x128xbf16>
    %cst = arith.constant dense<0.000000e+00> : vector<32x128xf32>
    %2 = tpu.matmul %0, %1, %cst {dimension_numbers = #tpu.dot_dimension_numbers<[1], [0], [0], [1], [0, 0, 1, 1], [], []>} : vector<32x256xbf16>, vector<256x128xbf16>, vector<32x128xf32> -> vector<32x128xf32>
    %c0_3 = arith.constant 0 : index
    %c0_4 = arith.constant 0 : index
    %3 = vector.load %arg3[%c0_3, %c0_4] : memref<1x128xf32, #tpu.memory_space<vmem>>, vector<1x128xf32>
    %4 = vector.broadcast %3 : vector<1x128xf32> to vector<32x128xf32>
    %5 = arith.addf %2, %4 : vector<32x128xf32>
    %c0_5 = arith.constant 0 : index
    %c0_6 = arith.constant 0 : index
    %6 = vector.load %arg4[%c0_5, %c0_6] : memref<32x128xf32, #tpu.memory_space<vmem>>, vector<32x128xf32>
    tpu.vector_store %arg4[%c0_5, %c0_6], %5 {strides = array<i32>} : memref<32x128xf32, #tpu.memory_space<vmem>>, vector<32x128xf32>,
    return
  }
  func.func @transform_0(%arg0: i32) -> (i32, i32) {
    %c0_i32 = arith.constant 0 : i32
    %c0_i32_0 = arith.constant 0 : i32
    return %arg0, %c0_i32 : i32, i32
  }
  func.func @transform_1(%arg0: i32) -> (i32, i32) {
    %c0_i32 = arith.constant 0 : i32
    %c0_i32_0 = arith.constant 0 : i32
    %c0_i32_1 = arith.constant 0 : i32
    return %c0_i32, %c0_i32_0 : i32, i32
  }
  func.func @transform_2(%arg0: i32) -> (i32, i32) {
    %c0_i32 = arith.constant 0 : i32
    %c0_i32_0 = arith.constant 0 : i32
    %c0_i32_1 = arith.constant 0 : i32
    return %c0_i32, %c0_i32_0 : i32, i32
  }
  func.func @transform_3(%arg0: i32) -> (i32, i32) {
    %c0_i32 = arith.constant 0 : i32
    %c0_i32_0 = arith.constant 0 : i32
    return %arg0, %c0_i32 : i32, i32
  }
}

</mosaic_0001>

<bundles_post_ra>
// kernel: patch_merge_forward.1
= control target key start
LH: loop header
LB: loop body
LE: loop exit
PB: predicated region body
PF: predicated region fallthrough
CT: control target
= control target key end

     0   :  { %s478_s0 = inlined_call_operand.vmem [shape: bf16[32,256], index: 0, kind: input, shape index: {}]   ;;  %s479_s1 = inlined_call_operand.vmem [shape: bf16[256,128], index: 1, kind: input, shape index: {}]   ;;  %s480_s2 = inlined_call_operand.vmem [shape: f32[1,128], index: 2, kind: input, shape index: {}]   ;;  %s481_s3 = inlined_call_operand.hbm [shape: f32[32,128], index: 3, kind: output, shape index: {}]  }
   0x1   :  { %v322_v0 = vld [vmem:[%s479_s1 + $0x38] sm:$0xff]  ;;  %v321_v2 = vld [vmem:[%s479_s1 + $0x30] sm:$0xff]  ;;  %v320_v4 = vld [vmem:[%s479_s1 + $0x28] sm:$0xff] }
   0x2   :  { %v330_v1 = vld [vmem:[%s479_s1 + $0x78] sm:$0xff]  ;;  %171 = vmatpush.bf16.msra.mxu0 %v322_v0  ;;  %331 = vmatpush.bf16.msra.mxu2 %v322_v0  ;;  %v329_v3 = vld [vmem:[%s479_s1 + $0x70] sm:$0xff]  ;;  %v328_v5 = vld [vmem:[%s479_s1 + $0x68] sm:$0xff] }
   0x3   :  { %190 = vmatpush.bf16.msra.mxu1 %v330_v1  ;;  %339 = vmatpush.bf16.msra.mxu3 %v330_v1 }
   0x6   :  { %172 = vmatpush.bf16.msra.mxu0 %v321_v2  ;;  %332 = vmatpush.bf16.msra.mxu2 %v321_v2 }
   0x7   :  { %191 = vmatpush.bf16.msra.mxu1 %v329_v3  ;;  %340 = vmatpush.bf16.msra.mxu3 %v329_v3 }
   0x8   :  { %8 = vsyncpa [#allocation3], 0  ;;  %v319_v6 = vld [vmem:[%s479_s1 + $0x20] sm:$0xff]  ;;  %v318_v8 = vld [vmem:[%s479_s1 + $0x18] sm:$0xff]  ;;  %s378_s10 = smov 128   ;;  %s379_s11 = smov 8  }
   0x9   :  { %v327_v7 = vld [vmem:[%s479_s1 + $0x60] sm:$0xff]  ;;  %v326_v9 = vld [vmem:[%s479_s1 + $0x58] sm:$0xff]  ;;  %v317_v10 = vld [vmem:[%s479_s1 + $0x10] sm:$0xff] }
   0xa   :  { %173 = vmatpush.bf16.msra.mxu0 %v320_v4  ;;  %333 = vmatpush.bf16.msra.mxu2 %v320_v4  ;;  %v325_v11 = vld [vmem:[%s479_s1 + $0x50] sm:$0xff]  ;;  %v316_v12 = vld [vmem:[%s479_s1 + $0x8] sm:$0xff]  ;;  %v315_v14 = vld [vmem:[%s479_s1] sm:$0xff] }
   0xb   :  { %192 = vmatpush.bf16.msra.mxu1 %v328_v5  ;;  %341 = vmatpush.bf16.msra.mxu3 %v328_v5  ;;  %v324_v13 = vld [vmem:[%s479_s1 + $0x48] sm:$0xff]  ;;  %v323_v15 = vld [vmem:[%s479_s1 + $0x40] sm:$0xff]  ;;  %v241_v18 = vld [vmem:[%s478_s0 + $0x10] sm:$0xf] }
   0xc   :  { %v233_v16 = vld [vmem:[%s478_s0] sm:$0xf]  ;;  %v312_v17 = vld [vmem:[%s478_s0 + $0x4] sm:$0xf0]  ;;  %v314_v19 = vld [vmem:[%s478_s0 + $0x14] sm:$0xf0] }
   0xd   :  { %v311_v20 = vld [vmem:[%s478_s0 + $0x4] sm:$0xf]  ;;  %v235_v21 = vld [vmem:[%s478_s0 + $0x8] sm:$0xf0]  ;;  %v313_v22 = vld [vmem:[%s478_s0 + $0x14] sm:$0xf]  ;;  %v234_v24 = vor.u32 %v312_v17, %v233_v16  ;;  %v242_v25 = vor.u32 %v314_v19, %v241_v18 }
   0xe   :  { %174 = vmatpush.bf16.msra.mxu0 %v319_v6  ;;  %334 = vmatpush.bf16.msra.mxu2 %v319_v6  ;;  %v243_v23 = vld [vmem:[%s478_s0 + $0x18] sm:$0xf0]  ;;  %v238_v26 = vor.u32 %v311_v20, %v235_v21  ;;  %v350_v28 = vld [vmem:[%s480_s2] ss:$0 sm:$0xff]  ;;  %s377_s0 = smov [#allocation2]   ;;  %s219_s2 = sshll.u32 %s481_s3, 4  ;;  %s220_s2 = int_to_ptr.hbm [resolvable:$true] %s219_s2 }
   0xf   :  { %193 = vmatpush.bf16.msra.mxu1 %v327_v7  ;;  %342 = vmatpush.bf16.msra.mxu3 %v327_v7  ;;  %v246_v27 = vor.u32 %v313_v22, %v243_v23  ;;  %s217_s7 = sshll.u32 %s377_s0, 4  ;;  %s218_s7 = int_to_ptr.vmem [resolvable:$true] %s217_s7 }
  0x12   :  { %175 = vmatpush.bf16.msra.mxu0 %v318_v8  ;;  %335 = vmatpush.bf16.msra.mxu2 %v318_v8 }
  0x13   :  { %194 = vmatpush.bf16.msra.mxu1 %v326_v9  ;;  %343 = vmatpush.bf16.msra.mxu3 %v326_v9 }
  0x16   :  { %176 = vmatpush.bf16.msra.mxu0 %v317_v10  ;;  %336 = vmatpush.bf16.msra.mxu2 %v317_v10 }
  0x17   :  { %195 = vmatpush.bf16.msra.mxu1 %v325_v11  ;;  %344 = vmatpush.bf16.msra.mxu3 %v325_v11 }
  0x1a   :  { %177 = vmatpush.bf16.msra.mxu0 %v316_v12  ;;  %337 = vmatpush.bf16.msra.mxu2 %v316_v12 }
  0x1b   :  { %196 = vmatpush.bf16.msra.mxu1 %v324_v13  ;;  %345 = vmatpush.bf16.msra.mxu3 %v324_v13 }
  0x1e   :  { %178 = vmatpush.bf16.msra.mxu0 %v315_v14  ;;  %338 = vmatpush.bf16.msra.mxu2 %v315_v14 }
  0x1f   :  { %197 = vmatpush.bf16.msra.mxu1 %v323_v15  ;;  %346 = vmatpush.bf16.msra.mxu3 %v323_v15 }
  0x21   :  { %179 = vmatmul.bf16.vlgmr.msra.gmra.mxu0 %v234_v24  ;;  %184 = vmatmul.bf16.vlgmr.msra.gmra.mxu2 %v242_v25 }
  0x22   :  { %198 = vmatmul.bf16.vlgmr.msra.gmra.mxu1 %v238_v26  ;;  %203 = vmatmul.bf16.vlgmr.msra.gmra.mxu3 %v246_v27 }
  0x9e   :  { %v180_v29 = vpop.f32.mrf.mxu0 }
  0x9f   :  { %v181_v30 = vadd.f32 %v350_v28, %v180_v29  ;;  %v199_v31 = vpop.f32.mrf.mxu1 }
  0xa1   :  { %v200_v32 = vadd.f32 %v199_v31, %v181_v30 }
  0xa3   :  { %209 = vst [vmem:[#allocation2] sm:$0xff] %v200_v32 }
  0xa4   :  { %v185_v33 = vpop.f32.mrf.mxu2 }
  0xa5   :  { %v186_v34 = vadd.f32 %v350_v28, %v185_v33  ;;  %v204_v35 = vpop.f32.mrf.mxu3 }
  0xa6   :  { %v182_v36 = vpop.f32.mrf.mxu0 }
  0xa7   :  { %v205_v37 = vadd.f32 %v204_v35, %v186_v34  ;;  %v183_v38 = vadd.f32 %v350_v28, %v182_v36  ;;  %v201_v39 = vpop.f32.mrf.mxu1 }
  0xa9   :  { %211 = vst [vmem:[#allocation2 + $0x10] sm:$0xff] %v205_v37  ;;  %v202_v40 = vadd.f32 %v201_v39, %v183_v38 }
  0xab   :  { %210 = vst [vmem:[#allocation2 + $0x8] sm:$0xff] %v202_v40 }
  0xac   :  { %v187_v41 = vpop.f32.mrf.mxu2 }
  0xad   :  { %v188_v42 = vadd.f32 %v350_v28, %v187_v41  ;;  %v206_v43 = vpop.f32.mrf.mxu3 }
  0xaf   :  { %v207_v44 = vadd.f32 %v206_v43, %v188_v42 }
  0xb1   :  { %212 = vst [vmem:[#allocation2 + $0x18] sm:$0xff] %v207_v44 }
  0xb2   :  { %225 = dma.vmem_to_hbm [thread:$0]  %s218_s7, 512, %s220_s2, [#allocation3], %s378_s10, %s378_s10, %s379_s11  }
  0xb3   :  { %375 = dma.done.wait [#allocation3], 512  }
  0xb4   :  { %376 = vsyncadd [#allocation3], 4294966784 }
  0xb5   :  { %230 = vsyncpa [#allocation3], 1 }

</bundles_post_ra>
